<compile_context>
chip_gen: v6e
topology: v6e:2x2x1
jax: 0.10.0
libtpu: 0.0.40
codegen_flags: <defaults>
</compile_context>

<pallas_src>
import jax
import jax.numpy as jnp
from jax.experimental import pallas as pl
from jax.experimental.pallas import tpu as pltpu


def policy_kernel(x_ref, w1_ref, b1_ref, w2_ref, b2_ref, o_ref):
    # fc1: x @ W1 + b1, ReLU.  Accumulate in f32 on the MXU.
    x = x_ref[...]
    h = jnp.dot(x, w1_ref[...], preferred_element_type=jnp.float32) + b1_ref[...]
    h = jnp.maximum(h, 0.0)
    # fc2: h @ W2 + b2 (W2/b2 are lane-padded to a multiple of 128 columns).
    logits = (
        jnp.dot(h.astype(w2_ref.dtype), w2_ref[...],
                preferred_element_type=jnp.float32)
        + b2_ref[...]
    )
    # Numerically stable softmax over the last axis.  Padded columns carry a
    # -1e30 bias, so exp underflows to exactly 0 and they never contribute.
    m = jnp.max(logits, axis=-1, keepdims=True)
    e = jnp.exp(logits - m)
    s = jnp.sum(e, axis=-1, keepdims=True)
    inv = pl.reciprocal(s, approx=True)        # EUP vrcp (otherwise-idle slot)
    inv = inv * (2.0 - s * inv)                # one Newton step -> ~f32 accuracy
    o_ref[...] = (e * inv).astype(o_ref.dtype)


def policy_forward(x, w1, b1, w2, b2, *, block_batch=512, stream_bf16=False):
    """x: (B, input_dim); w1: (input_dim, hidden); b1: (1, hidden);
    w2: (hidden, output_dim); b2: (1, output_dim).  Returns (B, output_dim) f32."""
    B, in_dim = x.shape
    hidden = w1.shape[1]
    out_dim = w2.shape[1]

    # --- lane-dense output: pad fc2 columns up to a multiple of 128 lanes ---
    lanes = 128
    padded_out = max(lanes, ((out_dim + lanes - 1) // lanes) * lanes)
    pad = padded_out - out_dim
    if pad:
        w2p = jnp.concatenate([w2, jnp.zeros((hidden, pad), w2.dtype)], axis=1)
        b2p = jnp.concatenate([b2, jnp.full((1, pad), -1e30, b2.dtype)], axis=1)
    else:
        w2p, b2p = w2, b2

    # --- optional bf16 streaming for the HBM-bound large-batch regime ---
    if stream_bf16:
        x = x.astype(jnp.bfloat16)
        w1 = w1.astype(jnp.bfloat16)
        w2p = w2p.astype(jnp.bfloat16)
    # Biases stay f32: they are added to the f32 MXU accumulators.

    # --- batch tiling ---
    tb = min(block_batch, B)
    if tb != B:
        tb = max(16, (tb // 16) * 16)  # sublane-aligned for both f32 and bf16
    grid = (pl.cdiv(B, tb),)

    out_padded = pl.pallas_call(
        policy_kernel,
        out_shape=jax.ShapeDtypeStruct((B, padded_out), jnp.float32),
        grid=grid,
        in_specs=[
            pl.BlockSpec((tb, in_dim), lambda i: (i, 0)),          # streamed
            pl.BlockSpec((in_dim, hidden), lambda i: (0, 0)),      # resident
            pl.BlockSpec((1, hidden), lambda i: (0, 0)),           # resident
            pl.BlockSpec((hidden, padded_out), lambda i: (0, 0)),  # resident
            pl.BlockSpec((1, padded_out), lambda i: (0, 0)),       # resident
        ],
        out_specs=pl.BlockSpec((tb, padded_out), lambda i: (i, 0)),
        compiler_params=pltpu.CompilerParams(
            dimension_semantics=("parallel",),  # megacore split on v7x
        ),
    )(x, w1, b1, w2p, b2p)

    return out_padded[:, :out_dim]


def init_params(key, input_dim, output_dim, hidden_dim=64):
    # Deterministic, PyTorch-Linear-style uniform(-1/sqrt(fan_in), 1/sqrt(fan_in)).
    k1, k2, k3, k4 = jax.random.split(key, 4)
    lim1 = 1.0 / jnp.sqrt(jnp.float32(input_dim))
    lim2 = 1.0 / jnp.sqrt(jnp.float32(hidden_dim))
    w1 = jax.random.uniform(k1, (input_dim, hidden_dim), jnp.float32, -lim1, lim1)
    b1 = jax.random.uniform(k2, (1, hidden_dim), jnp.float32, -lim1, lim1)
    w2 = jax.random.uniform(k3, (hidden_dim, output_dim), jnp.float32, -lim2, lim2)
    b2 = jax.random.uniform(k4, (1, output_dim), jnp.float32, -lim2, lim2)
    return w1, b1, w2, b2


def _reference(x, w1, b1, w2, b2):
    h = jnp.maximum(x @ w1 + b1, 0.0)
    return jax.nn.softmax(h @ w2 + b2, axis=1)


if __name__ == "__main__":
    input_dim, output_dim, hidden_dim = 16, 8, 64

    key = jax.random.PRNGKey(0)
    kx, kp, kx2 = jax.random.split(key, 3)
    w1, b1, w2, b2 = init_params(kp, input_dim, output_dim, hidden_dim)

    # --- small-batch f32 check (single tile, matches the module's tiny use) ---
    batch = 8
    x = jax.random.normal(kx, (batch, input_dim), jnp.float32)
    out = jax.block_until_ready(policy_forward(x, w1, b1, w2, b2))
    ref = _reference(x, w1, b1, w2, b2)
    assert out.shape == (batch, output_dim)
    assert jnp.allclose(out, ref, atol=1e-4), "f32 mismatch vs reference"
    assert jnp.allclose(jnp.sum(out, axis=1), 1.0, atol=1e-4)

    # --- larger batch: multi-tile grid (pipelined) + bf16 streaming path ---
    batch2 = 1024
    x2 = jax.random.normal(kx2, (batch2, input_dim), jnp.float32)
    out2 = jax.block_until_ready(
        policy_forward(x2, w1, b1, w2, b2, block_batch=512, stream_bf16=True))
    ref2 = _reference(x2, w1, b1, w2, b2)
    assert out2.shape == (batch2, output_dim)
    assert jnp.allclose(out2, ref2, atol=3e-2), "bf16 mismatch vs reference"
    assert jnp.allclose(jnp.sum(out2, axis=1), 1.0, atol=1e-2)

    print("KERNEL_OK")
</pallas_src>

<mosaic_0001>
module attributes {stable_mosaic.version = 11 : i64} {
  func.func @policy_kernel(%arg0: i32, %arg1: memref<8x16xf32, #tpu.memory_space<vmem>>, %arg2: memref<16x64xf32, #tpu.memory_space<vmem>>, %arg3: memref<1x64xf32, #tpu.memory_space<vmem>>, %arg4: memref<64x128xf32, #tpu.memory_space<vmem>>, %arg5: memref<1x128xf32, #tpu.memory_space<vmem>>, %arg6: memref<8x128xf32, #tpu.memory_space<vmem>>) attributes {dimension_semantics = [#tpu.dimension_semantics<parallel>], iteration_bounds = array<i64: 1>, scalar_prefetch = 0 : i64, scratch_operands = 0 : i64, tpu.core_type = #tpu.core_type<tc>, window_params = [{transform_indices = @transform_0, window_bounds = array<i64: 8, 16>}, {pipeline_mode = #tpu.pipeline_mode<synchronous>, transform_indices = @transform_1, window_bounds = array<i64: 16, 64>}, {pipeline_mode = #tpu.pipeline_mode<synchronous>, transform_indices = @transform_2, window_bounds = array<i64: 1, 64>}, {pipeline_mode = #tpu.pipeline_mode<synchronous>, transform_indices = @transform_3, window_bounds = array<i64: 64, 128>}, {pipeline_mode = #tpu.pipeline_mode<synchronous>, transform_indices = @transform_4, window_bounds = array<i64: 1, 128>}, {transform_indices = @transform_5, window_bounds = array<i64: 8, 128>}]} {
    %c0 = arith.constant 0 : index
    %c0_0 = arith.constant 0 : index
    %0 = vector.load %arg1[%c0, %c0_0] : memref<8x16xf32, #tpu.memory_space<vmem>>, vector<8x16xf32>
    %c0_1 = arith.constant 0 : index
    %c0_2 = arith.constant 0 : index
    %1 = vector.load %arg2[%c0_1, %c0_2] : memref<16x64xf32, #tpu.memory_space<vmem>>, vector<16x64xf32>
    %cst = arith.constant dense<0.000000e+00> : vector<8x64xf32>
    %2 = tpu.matmul %0, %1, %cst {dimension_numbers = #tpu.dot_dimension_numbers<[1], [0], [0], [1], [0, 0, 1, 1], [], []>} : vector<8x16xf32>, vector<16x64xf32>, vector<8x64xf32> -> vector<8x64xf32>
    %c0_3 = arith.constant 0 : index
    %c0_4 = arith.constant 0 : index
    %3 = vector.load %arg3[%c0_3, %c0_4] : memref<1x64xf32, #tpu.memory_space<vmem>>, vector<1x64xf32>
    %4 = vector.broadcast %3 : vector<1x64xf32> to vector<8x64xf32>
    %5 = arith.addf %2, %4 : vector<8x64xf32>
    %cst_5 = arith.constant 0.000000e+00 : f32
    %6 = vector.broadcast %cst_5 : f32 to vector<8x64xf32>
    %7 = arith.maximumf %5, %6 : vector<8x64xf32>
    %c0_6 = arith.constant 0 : index
    %c0_7 = arith.constant 0 : index
    %8 = vector.load %arg4[%c0_6, %c0_7] : memref<64x128xf32, #tpu.memory_space<vmem>>, vector<64x128xf32>
    %cst_8 = arith.constant dense<0.000000e+00> : vector<8x128xf32>
    %9 = tpu.matmul %7, %8, %cst_8 {dimension_numbers = #tpu.dot_dimension_numbers<[1], [0], [0], [1], [0, 0, 1, 1], [], []>} : vector<8x64xf32>, vector<64x128xf32>, vector<8x128xf32> -> vector<8x128xf32>
    %c0_9 = arith.constant 0 : index
    %c0_10 = arith.constant 0 : index
    %10 = vector.load %arg5[%c0_9, %c0_10] : memref<1x128xf32, #tpu.memory_space<vmem>>, vector<1x128xf32>
    %11 = vector.broadcast %10 : vector<1x128xf32> to vector<8x128xf32>
    %12 = arith.addf %9, %11 : vector<8x128xf32>
    %cst_11 = arith.constant dense<0xFF800000> : vector<8xf32>
    %13 = vector.multi_reduction <maximumf>, %12, %cst_11 [1] : vector<8x128xf32> to vector<8xf32>
    %14 = vector.shape_cast %13 : vector<8xf32> to vector<8x1xf32>
    %15 = vector.broadcast %14 : vector<8x1xf32> to vector<8x128xf32>
    %16 = arith.subf %12, %15 : vector<8x128xf32>
    %17 = math.exp %16 : vector<8x128xf32>
    %cst_12 = arith.constant dense<0.000000e+00> : vector<8xf32>
    %18 = vector.multi_reduction <add>, %17, %cst_12 [1] : vector<8x128xf32> to vector<8xf32>
    %19 = vector.shape_cast %18 : vector<8xf32> to vector<8x1xf32>
    %20 = tpu.reciprocal %19 {approx = true} : vector<8x1xf32> -> vector<8x1xf32>
    %21 = arith.mulf %19, %20 : vector<8x1xf32>
    %cst_13 = arith.constant 2.000000e+00 : f32
    %22 = vector.broadcast %cst_13 : f32 to vector<8x1xf32>
    %23 = arith.subf %22, %21 : vector<8x1xf32>
    %24 = arith.mulf %20, %23 : vector<8x1xf32>
    %25 = vector.broadcast %24 : vector<8x1xf32> to vector<8x128xf32>
    %26 = arith.mulf %17, %25 : vector<8x128xf32>
    %c0_14 = arith.constant 0 : index
    %c0_15 = arith.constant 0 : index
    %27 = vector.load %arg6[%c0_14, %c0_15] : memref<8x128xf32, #tpu.memory_space<vmem>>, vector<8x128xf32>
    tpu.vector_store %arg6[%c0_14, %c0_15], %26 {strides = array<i32>} : memref<8x128xf32, #tpu.memory_space<vmem>>, vector<8x128xf32>,
    return
  }
  func.func @transform_0(%arg0: i32) -> (i32, i32) {
    %c0_i32 = arith.constant 0 : i32
    %c0_i32_0 = arith.constant 0 : i32
    return %arg0, %c0_i32 : i32, i32
  }
  func.func @transform_1(%arg0: i32) -> (i32, i32) {
    %c0_i32 = arith.constant 0 : i32
    %c0_i32_0 = arith.constant 0 : i32
    %c0_i32_1 = arith.constant 0 : i32
    return %c0_i32, %c0_i32_0 : i32, i32
  }
  func.func @transform_2(%arg0: i32) -> (i32, i32) {
    %c0_i32 = arith.constant 0 : i32
    %c0_i32_0 = arith.constant 0 : i32
    %c0_i32_1 = arith.constant 0 : i32
    return %c0_i32, %c0_i32_0 : i32, i32
  }
  func.func @transform_3(%arg0: i32) -> (i32, i32) {
    %c0_i32 = arith.constant 0 : i32
    %c0_i32_0 = arith.constant 0 : i32
    %c0_i32_1 = arith.constant 0 : i32
    return %c0_i32, %c0_i32_0 : i32, i32
  }
  func.func @transform_4(%arg0: i32) -> (i32, i32) {
    %c0_i32 = arith.constant 0 : i32
    %c0_i32_0 = arith.constant 0 : i32
    %c0_i32_1 = arith.constant 0 : i32
    return %c0_i32, %c0_i32_0 : i32, i32
  }
  func.func @transform_5(%arg0: i32) -> (i32, i32) {
    %c0_i32 = arith.constant 0 : i32
    %c0_i32_0 = arith.constant 0 : i32
    return %arg0, %c0_i32 : i32, i32
  }
}

</mosaic_0001>

<bundles_post_ra>
// kernel: tpu_custom_call.1
= control target key start
LH: loop header
LB: loop body
LE: loop exit
PB: predicated region body
PF: predicated region fallthrough
CT: control target
= control target key end

     0   :  { %10 = vsyncpa [#allocation3], 0  ;;  %s459_s0 = inlined_call_operand.hbm [shape: f32[8,16], index: 0, kind: input, shape index: {}]   ;;  %s460_s1 = inlined_call_operand.hbm [shape: f32[16,64], index: 1, kind: input, shape index: {}]   ;;  %s461_s2 = inlined_call_operand.vmem [shape: f32[1,64], index: 2, kind: input, shape index: {}]   ;;  %s462_s3 = inlined_call_operand.hbm [shape: f32[64,128], index: 3, kind: input, shape index: {}]   ;;  %s463_s4 = inlined_call_operand.vmem [shape: f32[1,128], index: 4, kind: input, shape index: {}]   ;;  %s464_s5 = inlined_call_operand.hbm [shape: f32[8,128], index: 5, kind: output, shape index: {}]  }
   0x1   :  { %11 = vsyncpa [#allocation6], 0 }
   0x2   :  { %12 = vsyncpa [#allocation4], 0  ;;  %s403_s18 = smov [#allocation5]  }
   0x3   :  { %s28_s19 = sshll.u32 %s403_s18, 4  ;;  %s29_s19 = int_to_ptr.vmem [resolvable:$true] %s28_s19 }
   0x4   :  { %s325_s20 = scalar_lea.vmem %s29_s19, 256  ;;  %p330_p1 = scmp.lt.s32.totalorder %s29_s19, %s29_s19 }
   0x5   :  { %p326_p0 = scmp.ne.s32.totalorder %s29_s19, %s325_s20  ;;  %p331_p2 = scmp.lt.s32.totalorder %s325_s20, %s325_s20 }
   0x7   :  { %p332_p3 = por %p331_p2, %p330_p1 }
   0x9   :  { %p333_p4 = pnand %p332_p3, %p326_p0 }
   0xb   :  { %336 = shalt.err (!%p333_p4)
}
   0xc   :  { %s404_s21 = smov 128   ;;  %s405_s22 = smov 8  }
   0xd   :  { %34 = dma.hbm_to_vmem [thread:$0]  %s460_s1, 256, %s29_s19, [#allocation6], %s404_s21, %s404_s21, %s405_s22  }
   0xe   :  { %s406_s25 = smov [#allocation2]   ;;  %s407_s27 = smov [#allocation7]  }
   0xf   :  { %s19_s26 = sshll.u32 %s406_s25, 4  ;;  %s42_s28 = sshll.u32 %s407_s27, 4  ;;  %s20_s26 = int_to_ptr.vmem [resolvable:$true] %s19_s26  ;;  %s43_s28 = int_to_ptr.vmem [resolvable:$true] %s42_s28 }
  0x10   :  { %s345_s29 = scalar_lea.vmem %s20_s26, 128  ;;  %p350_p6 = scmp.lt.s32.totalorder %s20_s26, %s20_s26 }
  0x11   :  { %p346_p5 = scmp.ne.s32.totalorder %s20_s26, %s345_s29  ;;  %p351_p7 = scmp.lt.s32.totalorder %s345_s29, %s345_s29 }
  0x13   :  { %p352_p8 = por %p351_p7, %p350_p6 }
  0x15   :  { %p353_p9 = pnand %p352_p8, %p346_p5 }
  0x17   :  { %356 = shalt.err (!%p353_p9)
}
  0x18   :  { %22 = dma.hbm_to_vmem [thread:$0]  %s459_s0, 128, %s20_s26, [#allocation3]  }
  0x19   :  { %s365_s7 = scalar_lea.vmem %s43_s28, 1024  ;;  %p370_p11 = scmp.lt.s32.totalorder %s43_s28, %s43_s28 }
  0x1a   :  { %p366_p10 = scmp.ne.s32.totalorder %s43_s28, %s365_s7  ;;  %p371_p12 = scmp.lt.s32.totalorder %s365_s7, %s365_s7 }
  0x1c   :  { %p372_p13 = por %p371_p12, %p370_p11 }
  0x1e   :  { %p373_p0 = pnand %p372_p13, %p366_p10 }
  0x20   :  { %376 = shalt.err (!%p373_p0)
}
  0x21   :  { %48 = dma.hbm_to_vmem [thread:$0]  %s462_s3, 1024, %s43_s28, [#allocation6], %s404_s21, %s404_s21, %s405_s22  }
  0x22   :  { %397 = dma.done.wait [#allocation3], 128  }
  0x23   :  { %398 = vsyncadd [#allocation3], 4294967168 }
  0x24   :  { %399 = dma.done.wait [#allocation6], 1280  }
  0x25   :  { %400 = vsyncadd [#allocation6], 4294966016  ;;  %v408_v0 = vmov 0.0   ;;  %vm409_vm0 = vmmov 0   ;;  %v62_v1 = vld [vmem:[#allocation5 + $0x8] sm:$0xff]  ;;  %v61_v2 = vld [vmem:[#allocation5] sm:$0xff] }
  0x26   :  { %279 = vmatprep.subr.mxu0 %v408_v0  ;;  %283 = vmatprep.mubr.msk.f32.mxu0 %vm409_vm0, %v408_v0  ;;  %v60_v3 = vld [vmem:[#allocation2] sm:$0xff]  ;;  %vm70_vm1 = vcmask 130048   ;;  %v152_v4 = vld [vmem:[#allocation7 + $0x38] sm:$0xff]  ;;  %v151_v5 = vld [vmem:[#allocation7 + $0x30] sm:$0xff]  ;;  %vm160_vm2 = vcmask 523264  }
  0x27   :  { %286 = vmatprep.subr.mxu1 %v408_v0  ;;  %302 = vmatprep.mubr.msk.f32.mxu1 %vm409_vm0, %v408_v0  ;;  %v150_v6 = vld [vmem:[#allocation7 + $0x28] sm:$0xff]  ;;  %v149_v7 = vld [vmem:[#allocation7 + $0x20] sm:$0xff]  ;;  %v148_v8 = vld [vmem:[#allocation7 + $0x18] sm:$0xff] }
  0x28   :  { %280 = vmatpush3.msra.mxu0 %v62_v1  ;;  %287 = vmatpush3.msra.mxu1 %v152_v4  ;;  %v147_v9 = vld [vmem:[#allocation7 + $0x10] sm:$0xff]  ;;  %v146_v10 = vld [vmem:[#allocation7 + $0x8] sm:$0xff]  ;;  %v145_v11 = vld [vmem:[#allocation7] sm:$0xff] }
  0x29   :  { %281 = vmatprep.subr.mxu0 %v408_v0  ;;  %288 = vmatprep.subr.mxu1 %v408_v0  ;;  %v263_v12 = vld [vmem:[%s461_s2] ss:$0 sm:$0xff]  ;;  %s410_s2 = smov [#allocation8]  }
  0x2a   :  { %282 = vmatpush3.msra.mxu0 %v61_v2  ;;  %289 = vmatpush3.msra.mxu1 %v151_v5  ;;  %v265_v17 = vld [vmem:[%s463_s4] ss:$0 sm:$0xff]  ;;  %s253_s11 = sshll.u32 %s410_s2, 4  ;;  %s254_s11 = int_to_ptr.vmem [resolvable:$true] %s253_s11 }
  0x2b   :  { %284 = vmatmul.mubr.msk.f32.vlgmr.msra.gmra.mxu0 %vm70_vm1, %v60_v3  ;;  %290 = vmatprep.subr.mxu1 %v408_v0  ;;  %s377_s4 = scalar_lea.vmem %s254_s11, 128  ;;  %p382_p2 = scmp.lt.s32.totalorder %s254_s11, %s254_s11 }
  0x2c   :  { %291 = vmatpush3.msra.mxu1 %v150_v6  ;;  %p378_p1 = scmp.ne.s32.totalorder %s254_s11, %s377_s4  ;;  %p383_p3 = scmp.lt.s32.totalorder %s377_s4, %s377_s4 }
  0x2d   :  { %292 = vmatprep.subr.mxu1 %v408_v0 }
  0x2e   :  { %293 = vmatpush3.msra.mxu1 %v149_v7  ;;  %p384_p4 = por %p383_p3, %p382_p2 }
  0x2f   :  { %294 = vmatprep.subr.mxu1 %v408_v0 }
  0x30   :  { %295 = vmatpush3.msra.mxu1 %v148_v8  ;;  %p385_p5 = pnand %p384_p4, %p378_p1 }
  0x31   :  { %296 = vmatprep.subr.mxu1 %v408_v0 }
  0x32   :  { %297 = vmatpush3.msra.mxu1 %v147_v9 }
  0x33   :  { %298 = vmatprep.subr.mxu1 %v408_v0 }
  0x34   :  { %299 = vmatpush3.msra.mxu1 %v146_v10 }
  0x35   :  { %300 = vmatprep.subr.mxu1 %v408_v0 }
  0x36   :  { %301 = vmatpush3.msra.mxu1 %v145_v11 }
  0xeb   :  { %v140_v13 = vpop.f32.mrf.mxu0 }
  0xec   :  { %v141_v14 = vadd.f32 %v263_v12, %v140_v13 }
  0xed   :  { %v285_v15 = vpop.f32.mrf.mxu0 }
  0xee   :  { %v144_v16 = vmax.f32 %v141_v14, 0.0 }
  0xf0   :  { %303 = vmatmul.mubr.msk.f32.vlgmr.msra.gmra.mxu1 %vm160_vm2, %v144_v16 }
 0x1b0   :  { %v230_v18 = vpop.f32.mrf.mxu1 }
 0x1b1   :  { %v231_v19 = vadd.f32 %v265_v17, %v230_v18 }
 0x1b2   :  { %v304_v20 = vpop.f32.mrf.mxu1 }
 0x1b3   :  { %234 = vmax.xlane.f32.xlu0 %v231_v19 }
 0x23c   :  { %v235_v21 = vpop.xlane.xlu0 %234 }
 0x23d   :  { %v236_v22 = vsub.f32 %v231_v19, %v235_v21 }
 0x23f   :  { %v237_v23 = vmul.f32 1.442695, %v236_v22 }
 0x241   :  { %313 = vpow2.f32 %v237_v23 }
 0x24e   :  { %v314_v24 = vpop.eup %313 }
 0x24f   :  { %239 = vadd.xlane.f32.xlu0 %v314_v24 }
 0x2d8   :  { %v240_v25 = vpop.xlane.xlu0 %239 }
 0x2d9   :  { %315 = vrcp.f32 %v240_v25 }
 0x2e6   :  { %v316_v26 = vpop.eup %315 }
 0x2e7   :  { %v242_v27 = vmul.f32 %v316_v26, %v240_v25 }
 0x2e9   :  { %v243_v28 = vsub.f32 2.0, %v242_v27 }
 0x2eb   :  { %v244_v29 = vmul.f32 %v316_v26, %v243_v28 }
 0x2ed   :  { %v245_v30 = vmul.f32 %v314_v24, %v244_v29 }
 0x2ef   :  { %246 = vst [vmem:[#allocation8] sm:$0xff] %v245_v30 }
 0x2f0   :  { %388 = shalt.err (!%p385_p5)
}
 0x2f1   :  { %256 = dma.vmem_to_hbm [thread:$0]  %s254_s11, 128, %s464_s5, [#allocation4]  }
 0x2f2   :  { %401 = dma.done.wait [#allocation4], 128  }
 0x2f3   :  { %402 = vsyncadd [#allocation4], 4294967168 }
 0x2f4   :  { %260 = vsyncpa [#allocation3], 1 }
 0x2f5   :  { %261 = vsyncpa [#allocation6], 1 }
 0x2f6   :  { %262 = vsyncpa [#allocation4], 1 }

</bundles_post_ra>
